<compile_context>
chip_gen: v5e
topology: v5e:2x2
jax: 0.10.0
libtpu: 0.0.40
codegen_flags: <defaults>
</compile_context>

<pallas_src>
import jax
import jax.numpy as jnp
from jax.experimental import pallas as pl
from jax.experimental.pallas import tpu as pltpu


def _round_up(x, m):
    return (x + m - 1) // m * m


_SUBLANE = 16  # bf16 input packs 16 rows per sublane group; keep tiles aligned.


def _policy_kernel(sb_ref,            # SMEM (2,) f32: [act_scale, act_bias]
                   x_ref,             # (TB, state_dim) bf16
                   w1_ref, b1_ref,    # (state_dim, 256) bf16, (1, 256) f32
                   w2_ref, b2_ref,    # (256, 128) bf16,       (1, 128) f32
                   w3_ref, b3_ref,    # (128, A_pad) bf16,     (1, A_pad) f32
                   o_ref):            # (TB, action_dim) f32 (compact store)
    scale = sb_ref[0]
    bias = sb_ref[1]

    x = x_ref[...]                                                 # bf16

    # Layer 1: Linear(state_dim, 256) + ReLU  (bf16 MXU operands, f32 acc)
    h1 = jnp.dot(x, w1_ref[...],
                 preferred_element_type=jnp.float32) + b1_ref[...]
    h1 = jnp.maximum(h1, 0.0)

    # Layer 2: Linear(256, 128) + ReLU
    h2 = jnp.dot(h1.astype(jnp.bfloat16), w2_ref[...],
                 preferred_element_type=jnp.float32) + b2_ref[...]
    h2 = jnp.maximum(h2, 0.0)

    # Layer 3: Linear(128, action_dim) + tanh + action-space affine rescale.
    h3 = jnp.dot(h2.astype(jnp.bfloat16), w3_ref[...],
                 preferred_element_type=jnp.float32) + b3_ref[...]
    y = scale * jnp.tanh(h3) + bias                                # (TB, A_pad)

    # Compact store: drop the lane padding, write only action_dim columns.
    o_ref[...] = y[:, :o_ref.shape[-1]]


def prepare_params(params):
    """One-time packing of the (PyTorch-layout) params for the kernel.

    Hoisted out of policy_forward so bf16 casts / lane padding are not re-run
    on every call.  Returns (w1b, b1, w2b, b2, w3b, b3p, action_dim).
    """
    w1, b1, w2, b2, w3, b3 = params
    action_dim = int(w3.shape[1])
    a_pad = _round_up(max(action_dim, 128), 128)
    w3p = jnp.zeros((w3.shape[0], a_pad), jnp.float32).at[:, :action_dim].set(w3)
    b3p = jnp.zeros((1, a_pad), jnp.float32).at[:, :action_dim].set(
        jnp.asarray(b3, jnp.float32).reshape(1, -1))
    return (w1.astype(jnp.bfloat16),
            jnp.asarray(b1, jnp.float32).reshape(1, -1),
            w2.astype(jnp.bfloat16),
            jnp.asarray(b2, jnp.float32).reshape(1, -1),
            w3p.astype(jnp.bfloat16),
            b3p,
            action_dim)


def _tile_batch(batch, block_batch):
    """Balanced batch tiling: roughly equal tiles <= block_batch, multiple of 16."""
    n_tiles = max(1, -(-batch // block_batch))            # cdiv
    # v7x has 2 TensorCores; once there is enough work, make sure the
    # "parallel" batch axis has >= 2 grid steps (harmless elsewhere).
    if batch >= 256:
        n_tiles = max(n_tiles, 2)
    tb = _round_up(-(-batch // n_tiles), _SUBLANE)
    b_pad = _round_up(batch, tb)
    return tb, b_pad, b_pad // tb


def policy_forward(state, packed_params, act_scale, act_bias, *, block_batch=1024):
    """state: (B, state_dim) f32 -> (B, action_dim) f32.

    `packed_params` must come from prepare_params() (call it once, reuse).
    """
    w1b, b1, w2b, b2, w3b, b3p, action_dim = packed_params
    batch, state_dim = state.shape

    tb, b_pad, nb = _tile_batch(batch, block_batch)

    # bf16 state + batch padding done outside the kernel (halves input DMA).
    x = state.astype(jnp.bfloat16)
    if b_pad != batch:
        x = jnp.pad(x, ((0, b_pad - batch), (0, 0)))

    # act_scale / act_bias as runtime SMEM scalars (no recompile per action space).
    scale_bias = jnp.asarray([act_scale, act_bias], jnp.float32)

    resident = lambda shape: pl.BlockSpec(shape, lambda i: (0, 0))  # VMEM-resident

    out = pl.pallas_call(
        _policy_kernel,
        out_shape=jax.ShapeDtypeStruct((b_pad, action_dim), jnp.float32),
        grid_spec=pltpu.PrefetchScalarGridSpec(
            num_scalar_prefetch=0,
            grid=(nb,),
            in_specs=[
                pl.BlockSpec(memory_space=pltpu.MemorySpace.SMEM),   # scale/bias
                pl.BlockSpec((tb, state_dim), lambda i: (i, 0)),     # state tile
                resident(w1b.shape), resident(b1.shape),
                resident(w2b.shape), resident(b2.shape),
                resident(w3b.shape), resident(b3p.shape),
            ],
            # Compact output: last dim == full array dim (escape of the 128 rule).
            out_specs=pl.BlockSpec((tb, action_dim), lambda i: (i, 0)),
        ),
        compiler_params=pltpu.CompilerParams(
            dimension_semantics=("parallel",),        # shard batch over v7x's 2 TCs
            vmem_limit_bytes=32 * 1024 * 1024,        # safe on v5e/v6e/v7x
        ),
    )(scale_bias, x, w1b, b1, w2b, b2, w3b, b3p)

    return out[:batch]


def init_params(key, state_dim, action_dim):
    """Deterministic init mirroring torch.nn.Linear default (U[-1/sqrt(fan_in), +])."""
    def linear(key, fan_in, fan_out):
        kw, kb = jax.random.split(key)
        bound = 1.0 / jnp.sqrt(jnp.float32(fan_in))
        w = jax.random.uniform(kw, (fan_in, fan_out), jnp.float32, -bound, bound)
        b = jax.random.uniform(kb, (1, fan_out), jnp.float32, -bound, bound)
        return w, b

    k1, k2, k3 = jax.random.split(key, 3)
    w1, b1 = linear(k1, state_dim, 256)
    w2, b2 = linear(k2, 256, 128)
    w3, b3 = linear(k3, 128, action_dim)
    return (w1, b1, w2, b2, w3, b3)


def _ref_forward(state, params, act_scale, act_bias):
    """Plain-JAX reference with the same bf16-operand / f32-accumulate math."""
    w1, b1, w2, b2, w3, b3 = params
    bf = jnp.bfloat16
    h1 = jnp.maximum(jnp.dot(state.astype(bf), w1.astype(bf),
                             preferred_element_type=jnp.float32) + b1, 0.0)
    h2 = jnp.maximum(jnp.dot(h1.astype(bf), w2.astype(bf),
                             preferred_element_type=jnp.float32) + b2, 0.0)
    h3 = jnp.dot(h2.astype(bf), w3.astype(bf),
                 preferred_element_type=jnp.float32) + b3
    return act_scale * jnp.tanh(h3) + act_bias


if __name__ == "__main__":
    # Small synthetic problem consistent with the module's forward.
    state_dim = 16
    action_dim = 4

    # Synthetic action space: low = -1, high = 3  ->  scale = 2.0, bias = 1.0
    action_low, action_high = -1.0, 3.0
    act_scale = abs(action_low - action_high) / 2.0
    act_bias = (action_high + action_low) / 2.0

    key = jax.random.PRNGKey(0)
    k_params, k_state1, k_state2 = jax.random.split(key, 3)
    params = init_params(k_params, state_dim, action_dim)
    packed = prepare_params(params)          # one-time prep (hoisted out of the call)

    # 1) Small acting batch (single tile).
    batch = 2
    state = jax.random.normal(k_state1, (batch, state_dim), jnp.float32)
    out = jax.block_until_ready(policy_forward(state, packed, act_scale, act_bias))
    ref = _ref_forward(state, params, act_scale, act_bias)
    assert out.shape == (batch, action_dim)
    assert jnp.allclose(out, ref, atol=2e-3, rtol=2e-3), \
        float(jnp.max(jnp.abs(out - ref)))

    # 2) Larger batch exercising balanced multi-tile path + batch padding.
    batch2 = 300
    state2 = jax.random.normal(k_state2, (batch2, state_dim), jnp.float32)
    out2 = jax.block_until_ready(policy_forward(state2, packed, act_scale, act_bias))
    ref2 = _ref_forward(state2, params, act_scale, act_bias)
    assert out2.shape == (batch2, action_dim)
    assert jnp.allclose(out2, ref2, atol=2e-3, rtol=2e-3), \
        float(jnp.max(jnp.abs(out2 - ref2)))

    print("KERNEL_OK")
</pallas_src>

<mosaic_0001>
module attributes {stable_mosaic.version = 11 : i64} {
  func.func @_policy_kernel(%arg0: i32, %arg1: memref<2xf32, #tpu.memory_space<smem>>, %arg2: memref<16x16xbf16, #tpu.memory_space<vmem>>, %arg3: memref<16x256xbf16, #tpu.memory_space<vmem>>, %arg4: memref<1x256xf32, #tpu.memory_space<vmem>>, %arg5: memref<256x128xbf16, #tpu.memory_space<vmem>>, %arg6: memref<1x128xf32, #tpu.memory_space<vmem>>, %arg7: memref<128x128xbf16, #tpu.memory_space<vmem>>, %arg8: memref<1x128xf32, #tpu.memory_space<vmem>>, %arg9: memref<16x4xf32, #tpu.memory_space<vmem>>) attributes {dimension_semantics = [#tpu.dimension_semantics<parallel>], iteration_bounds = array<i64: 1>, scalar_prefetch = 0 : i64, scratch_operands = 0 : i64, tpu.core_type = #tpu.core_type<tc>, window_params = [{transform_indices = @transform_0, window_bounds = array<i64: 2>}, {transform_indices = @transform_1, window_bounds = array<i64: 16, 16>}, {pipeline_mode = #tpu.pipeline_mode<synchronous>, transform_indices = @transform_2, window_bounds = array<i64: 16, 256>}, {pipeline_mode = #tpu.pipeline_mode<synchronous>, transform_indices = @transform_3, window_bounds = array<i64: 1, 256>}, {pipeline_mode = #tpu.pipeline_mode<synchronous>, transform_indices = @transform_4, window_bounds = array<i64: 256, 128>}, {pipeline_mode = #tpu.pipeline_mode<synchronous>, transform_indices = @transform_5, window_bounds = array<i64: 1, 128>}, {pipeline_mode = #tpu.pipeline_mode<synchronous>, transform_indices = @transform_6, window_bounds = array<i64: 128, 128>}, {pipeline_mode = #tpu.pipeline_mode<synchronous>, transform_indices = @transform_7, window_bounds = array<i64: 1, 128>}, {transform_indices = @transform_8, window_bounds = array<i64: 16, 4>}]} {
    %c0 = arith.constant 0 : index
    %0 = memref.load %arg1[%c0] : memref<2xf32, #tpu.memory_space<smem>>
    %c1 = arith.constant 1 : index
    %1 = memref.load %arg1[%c1] : memref<2xf32, #tpu.memory_space<smem>>
    %c0_0 = arith.constant 0 : index
    %c0_1 = arith.constant 0 : index
    %2 = vector.load %arg2[%c0_0, %c0_1] : memref<16x16xbf16, #tpu.memory_space<vmem>>, vector<16x16xbf16>
    %c0_2 = arith.constant 0 : index
    %c0_3 = arith.constant 0 : index
    %3 = vector.load %arg3[%c0_2, %c0_3] : memref<16x256xbf16, #tpu.memory_space<vmem>>, vector<16x256xbf16>
    %cst = arith.constant dense<0.000000e+00> : vector<16x256xf32>
    %4 = tpu.matmul %2, %3, %cst {dimension_numbers = #tpu.dot_dimension_numbers<[1], [0], [0], [1], [0, 0, 1, 1], [], []>} : vector<16x16xbf16>, vector<16x256xbf16>, vector<16x256xf32> -> vector<16x256xf32>
    %c0_4 = arith.constant 0 : index
    %c0_5 = arith.constant 0 : index
    %5 = vector.load %arg4[%c0_4, %c0_5] : memref<1x256xf32, #tpu.memory_space<vmem>>, vector<1x256xf32>
    %6 = vector.broadcast %5 : vector<1x256xf32> to vector<16x256xf32>
    %7 = arith.addf %4, %6 : vector<16x256xf32>
    %cst_6 = arith.constant 0.000000e+00 : f32
    %8 = vector.broadcast %cst_6 : f32 to vector<16x256xf32>
    %9 = arith.maximumf %7, %8 : vector<16x256xf32>
    %10 = arith.truncf %9 : vector<16x256xf32> to vector<16x256xbf16>
    %c0_7 = arith.constant 0 : index
    %c0_8 = arith.constant 0 : index
    %11 = vector.load %arg5[%c0_7, %c0_8] : memref<256x128xbf16, #tpu.memory_space<vmem>>, vector<256x128xbf16>
    %cst_9 = arith.constant dense<0.000000e+00> : vector<16x128xf32>
    %12 = tpu.matmul %10, %11, %cst_9 {dimension_numbers = #tpu.dot_dimension_numbers<[1], [0], [0], [1], [0, 0, 1, 1], [], []>} : vector<16x256xbf16>, vector<256x128xbf16>, vector<16x128xf32> -> vector<16x128xf32>
    %c0_10 = arith.constant 0 : index
    %c0_11 = arith.constant 0 : index
    %13 = vector.load %arg6[%c0_10, %c0_11] : memref<1x128xf32, #tpu.memory_space<vmem>>, vector<1x128xf32>
    %14 = vector.broadcast %13 : vector<1x128xf32> to vector<16x128xf32>
    %15 = arith.addf %12, %14 : vector<16x128xf32>
    %cst_12 = arith.constant 0.000000e+00 : f32
    %16 = vector.broadcast %cst_12 : f32 to vector<16x128xf32>
    %17 = arith.maximumf %15, %16 : vector<16x128xf32>
    %18 = arith.truncf %17 : vector<16x128xf32> to vector<16x128xbf16>
    %c0_13 = arith.constant 0 : index
    %c0_14 = arith.constant 0 : index
    %19 = vector.load %arg7[%c0_13, %c0_14] : memref<128x128xbf16, #tpu.memory_space<vmem>>, vector<128x128xbf16>
    %cst_15 = arith.constant dense<0.000000e+00> : vector<16x128xf32>
    %20 = tpu.matmul %18, %19, %cst_15 {dimension_numbers = #tpu.dot_dimension_numbers<[1], [0], [0], [1], [0, 0, 1, 1], [], []>} : vector<16x128xbf16>, vector<128x128xbf16>, vector<16x128xf32> -> vector<16x128xf32>
    %c0_16 = arith.constant 0 : index
    %c0_17 = arith.constant 0 : index
    %21 = vector.load %arg8[%c0_16, %c0_17] : memref<1x128xf32, #tpu.memory_space<vmem>>, vector<1x128xf32>
    %22 = vector.broadcast %21 : vector<1x128xf32> to vector<16x128xf32>
    %23 = arith.addf %20, %22 : vector<16x128xf32>
    %24 = math.tanh %23 : vector<16x128xf32>
    %25 = vector.broadcast %0 : f32 to vector<16x128xf32>
    %26 = arith.mulf %25, %24 : vector<16x128xf32>
    %27 = vector.broadcast %1 : f32 to vector<16x128xf32>
    %28 = arith.addf %26, %27 : vector<16x128xf32>
    %29 = vector.extract_strided_slice %28 {offsets = [0, 0], sizes = [16, 4], strides = [1, 1]} : vector<16x128xf32> to vector<16x4xf32>
    %c0_18 = arith.constant 0 : index
    %c0_19 = arith.constant 0 : index
    %30 = vector.load %arg9[%c0_18, %c0_19] : memref<16x4xf32, #tpu.memory_space<vmem>>, vector<16x4xf32>
    tpu.vector_store %arg9[%c0_18, %c0_19], %29 {strides = array<i32>} : memref<16x4xf32, #tpu.memory_space<vmem>>, vector<16x4xf32>,
    return
  }
  func.func @transform_0(%arg0: i32) -> i32 {
    %c0_i32 = arith.constant 0 : i32
    %c0_i32_0 = arith.constant 0 : i32
    return %c0_i32 : i32
  }
  func.func @transform_1(%arg0: i32) -> (i32, i32) {
    %c0_i32 = arith.constant 0 : i32
    %c0_i32_0 = arith.constant 0 : i32
    return %arg0, %c0_i32 : i32, i32
  }
  func.func @transform_2(%arg0: i32) -> (i32, i32) {
    %c0_i32 = arith.constant 0 : i32
    %c0_i32_0 = arith.constant 0 : i32
    %c0_i32_1 = arith.constant 0 : i32
    return %c0_i32, %c0_i32_0 : i32, i32
  }
  func.func @transform_3(%arg0: i32) -> (i32, i32) {
    %c0_i32 = arith.constant 0 : i32
    %c0_i32_0 = arith.constant 0 : i32
    %c0_i32_1 = arith.constant 0 : i32
    return %c0_i32, %c0_i32_0 : i32, i32
  }
  func.func @transform_4(%arg0: i32) -> (i32, i32) {
    %c0_i32 = arith.constant 0 : i32
    %c0_i32_0 = arith.constant 0 : i32
    %c0_i32_1 = arith.constant 0 : i32
    return %c0_i32, %c0_i32_0 : i32, i32
  }
  func.func @transform_5(%arg0: i32) -> (i32, i32) {
    %c0_i32 = arith.constant 0 : i32
    %c0_i32_0 = arith.constant 0 : i32
    %c0_i32_1 = arith.constant 0 : i32
    return %c0_i32, %c0_i32_0 : i32, i32
  }
  func.func @transform_6(%arg0: i32) -> (i32, i32) {
    %c0_i32 = arith.constant 0 : i32
    %c0_i32_0 = arith.constant 0 : i32
    %c0_i32_1 = arith.constant 0 : i32
    return %c0_i32, %c0_i32_0 : i32, i32
  }
  func.func @transform_7(%arg0: i32) -> (i32, i32) {
    %c0_i32 = arith.constant 0 : i32
    %c0_i32_0 = arith.constant 0 : i32
    %c0_i32_1 = arith.constant 0 : i32
    return %c0_i32, %c0_i32_0 : i32, i32
  }
  func.func @transform_8(%arg0: i32) -> (i32, i32) {
    %c0_i32 = arith.constant 0 : i32
    %c0_i32_0 = arith.constant 0 : i32
    return %arg0, %c0_i32 : i32, i32
  }
}

</mosaic_0001>

<bundles_post_ra>
// kernel: tpu_custom_call.1
= control target key start
LH: loop header
LB: loop body
LE: loop exit
PB: predicated region body
PF: predicated region fallthrough
CT: control target
= control target key end

     0   :  { %13 = vsyncpa [#allocation4], 0  ;;  %s788_s0 = inlined_call_operand.hbm [shape: f32[2], index: 0, kind: input, shape index: {}]   ;;  %s789_s1 = inlined_call_operand.hbm [shape: bf16[16,16], index: 1, kind: input, shape index: {}]   ;;  %s790_s2 = inlined_call_operand.hbm [shape: bf16[16,256], index: 2, kind: input, shape index: {}]   ;;  %s791_s3 = inlined_call_operand.vmem [shape: f32[1,256], index: 3, kind: input, shape index: {}]   ;;  %s792_s4 = inlined_call_operand.hbm [shape: bf16[256,128], index: 4, kind: input, shape index: {}]   ;;  %s793_s5 = inlined_call_operand.vmem [shape: f32[1,128], index: 5, kind: input, shape index: {}]   ;;  %s794_s6 = inlined_call_operand.hbm [shape: bf16[128,128], index: 6, kind: input, shape index: {}]   ;;  %s795_s7 = inlined_call_operand.vmem [shape: f32[1,128], index: 7, kind: input, shape index: {}]   ;;  %s796_s8 = inlined_call_operand.vmem [shape: f32[16,4], index: 8, kind: output, shape index: {}]  }
   0x1   :  { %14 = vsyncpa [#allocation3], 0 }
   0x2   :  { %15 = vsyncpa [#allocation7], 0  ;;  %s43_s29 = sshll.u32 %s790_s2, 4  ;;  %s44_s29 = int_to_ptr.hbm [resolvable:$true] %s43_s29 }
   0x3   :  { %16 = vsyncpa [#allocation10], 0  ;;  %s704_s30 = smov [#allocation6]   ;;  %s22_s12 = sshll.u32 %s788_s0, 4  ;;  %s23_s12 = int_to_ptr.hbm [resolvable:$true] %s22_s12 }
   0x4   :  { %s45_s9 = sshll.u32 %s704_s30, 4  ;;  %s705_s13 = smov 128   ;;  %s46_s9 = int_to_ptr.vmem [resolvable:$true] %s45_s9 }
   0x5   :  { %s706_s14 = smov 8   ;;  %s707_s15 = smov [#allocation2]  }
   0x6   :  { %51 = dma.hbm_to_vmem [thread:$0]  %s44_s29, 256, %s46_s9, [#allocation7], %s705_s13, %s705_s13, %s706_s14  }
   0x7   :  { %25 = dma.hbm_to_smem %s23_s12, 16, %s707_s15, [#allocation4]  }
   0x8   :  { %s30_s18 = sshll.u32 %s789_s1, 4  ;;  %s708_s2 = smov [#allocation5]   ;;  %s31_s18 = int_to_ptr.hbm [resolvable:$true] %s30_s18 }
   0x9   :  { %s32_s19 = sshll.u32 %s708_s2, 4  ;;  %s58_s22 = sshll.u32 %s792_s4, 4  ;;  %s33_s19 = int_to_ptr.vmem [resolvable:$true] %s32_s19  ;;  %s59_s22 = int_to_ptr.hbm [resolvable:$true] %s58_s22 }
   0xa   :  { %s709_s23 = smov 64   ;;  %s710_s0 = smov 4  }
   0xb   :  { %38 = dma.hbm_to_vmem [thread:$0]  %s31_s18, 128, %s33_s19, [#allocation3], %s709_s23, %s709_s23, %s710_s0  }
   0xc   :  { %s711_s24 = smov [#allocation8]   ;;  %s73_s28 = sshll.u32 %s794_s6, 4  ;;  %s74_s28 = int_to_ptr.hbm [resolvable:$true] %s73_s28 }
   0xd   :  { %s60_s25 = sshll.u32 %s711_s24, 4  ;;  %s712_s1 = smov [#allocation9]   ;;  %s61_s25 = int_to_ptr.vmem [resolvable:$true] %s60_s25 }
   0xe   :  { %66 = dma.hbm_to_vmem [thread:$0]  %s59_s22, 2048, %s61_s25, [#allocation7], %s709_s23, %s709_s23, %s710_s0  }
   0xf   :  { %s75_s29 = sshll.u32 %s712_s1, 4  ;;  %s76_s29 = int_to_ptr.vmem [resolvable:$true] %s75_s29 }
  0x10   :  { %81 = dma.hbm_to_vmem [thread:$0]  %s74_s28, 1024, %s76_s29, [#allocation10], %s709_s23, %s709_s23, %s710_s0  }
  0x11   :  { %696 = dma.done.wait [#allocation4], 16  }
  0x12   :  { %697 = vsyncadd [#allocation4], 4294967280 }
  0x13   :  { %698 = dma.done.wait [#allocation3], 128  }
  0x14   :  { %699 = vsyncadd [#allocation3], 4294967168 }
  0x15   :  { %700 = dma.done.wait [#allocation7], 2304  }
  0x16   :  { %701 = vsyncadd [#allocation7], 4294964992 }
  0x17   :  { %702 = dma.done.wait [#allocation10], 1024  }
  0x18   :  { %703 = vsyncadd [#allocation10], 4294966272 }
  0x19   :  { %104 = sfence }
  0x1a   :  { %v442_v0 = vld [vmem:[#allocation6] sm:$0xf]  ;;  %v548_v1 = vld [vmem:[#allocation6 + $0x4] sm:$0xf0]  ;;  %v547_v3 = vld [vmem:[#allocation6 + $0x4] sm:$0xf] }
  0x1b   :  { %v443_v2 = vor.u32 %v548_v1, %v442_v0  ;;  %v444_v4 = vld [vmem:[#allocation6 + $0x8] sm:$0xf0]  ;;  %v546_v6 = vld [vmem:[#allocation5] sm:$0xff]  ;;  %vm133_vm0 = vcmask 130048   ;;  %v555_v8 = vld [vmem:[#allocation8 + $0x30] sm:$0xff]  ;;  %s106_s11 = sld [smem:[#allocation2]] }
  0x1c   :  { %v556_v5 = vld [vmem:[#allocation8 + $0x38] sm:$0xff]  ;;  %v447_v7 = vor.u32 %v547_v3, %v444_v4  ;;  %v554_v9 = vld [vmem:[#allocation8 + $0x28] sm:$0xff]  ;;  %v553_v10 = vld [vmem:[#allocation8 + $0x20] sm:$0xff]  ;;  %s435_s12 = sld [smem:[#allocation2 + $0x1]]  ;;  %vm424_vm1 = vcmask 31744  }
  0x1d   :  { %144 = vmatpush.bf16.msra.mxu1 %v443_v2  ;;  %303 = vmatpush.bf16.msra.mxu2 %v556_v5  ;;  %v552_v11 = vld [vmem:[#allocation8 + $0x18] sm:$0xff]  ;;  %v551_v13 = vld [vmem:[#allocation8 + $0x10] sm:$0xff]  ;;  %v550_v15 = vld [vmem:[#allocation8 + $0x8] sm:$0xff] }
  0x1e   :  { %v564_v12 = vld [vmem:[#allocation8 + $0x78] sm:$0xff]  ;;  %v563_v14 = vld [vmem:[#allocation8 + $0x70] sm:$0xff]  ;;  %v562_v16 = vld [vmem:[#allocation8 + $0x68] sm:$0xff] }
  0x1f   :  { %317 = vmatpush.bf16.msra.mxu3 %v564_v12  ;;  %v549_v17 = vld [vmem:[#allocation8] sm:$0xff]  ;;  %v560_v19 = vld [vmem:[#allocation8 + $0x58] sm:$0xff]  ;;  %v559_v20 = vld [vmem:[#allocation8 + $0x50] sm:$0xff] }
  0x20   :  { %448 = vmatmul.msk.bf16.vlgmr.msra.gmra.mxu1 %vm133_vm0, %v546_v6  ;;  %v561_v18 = vld [vmem:[#allocation8 + $0x60] sm:$0xff]  ;;  %v558_v21 = vld [vmem:[#allocation8 + $0x48] sm:$0xff]  ;;  %v572_v40 = vld [vmem:[#allocation9 + $0x38] sm:$0xff] }
  0x21   :  { %158 = vmatpush.bf16.msrb.mxu1 %v447_v7  ;;  %304 = vmatpush.bf16.msra.mxu2 %v555_v8  ;;  %v557_v22 = vld [vmem:[#allocation8 + $0x40] sm:$0xff]  ;;  %v112_v23 = vld [vmem:[%s791_s3] sm:$0x3]  ;;  %v571_v41 = vld [vmem:[#allocation9 + $0x30] sm:$0xff]  ;;  %v418_v63 = vstv %s106_s11 }
  0x22   :  { %v114_v25 = vperm.slane %v112_v23, 0  ;;  %v115_v33 = vperm.slane %v112_v23, 1  ;;  %402 = vmatpush.bf16.msra.mxu0 %v572_v40  ;;  %v570_v42 = vld [vmem:[#allocation9 + $0x28] sm:$0xff]  ;;  %v569_v43 = vld [vmem:[#allocation9 + $0x20] sm:$0xff]  ;;  %v568_v44 = vld [vmem:[#allocation9 + $0x18] sm:$0xff]  ;;  %v421_v2 = vstv %s435_s12 }
  0x23   :  { %318 = vmatpush.bf16.msra.mxu3 %v563_v14  ;;  %v567_v45 = vld [vmem:[#allocation9 + $0x10] sm:$0xff]  ;;  %v566_v46 = vld [vmem:[#allocation9 + $0x8] sm:$0xff]  ;;  %v565_v47 = vld [vmem:[#allocation9] sm:$0xff] }
  0x24   :  { %v582_v50 = vld [vmem:[%s793_s5] ss:$0 sm:$0xff] }
  0x25   :  { %305 = vmatpush.bf16.msra.mxu2 %v554_v9  ;;  %v583_v60 = vld [vmem:[%s795_s7] ss:$0 sm:$0xff] }
  0x26   :  { %403 = vmatpush.bf16.msra.mxu0 %v571_v41 }
  0x27   :  { %319 = vmatpush.bf16.msra.mxu3 %v562_v16 }
  0x29   :  { %306 = vmatpush.bf16.msra.mxu2 %v553_v10 }
  0x2a   :  { %404 = vmatpush.bf16.msra.mxu0 %v570_v42 }
  0x2b   :  { %320 = vmatpush.bf16.msra.mxu3 %v561_v18 }
  0x2d   :  { %307 = vmatpush.bf16.msra.mxu2 %v552_v11 }
  0x2e   :  { %405 = vmatpush.bf16.msra.mxu0 %v569_v43 }
  0x2f   :  { %321 = vmatpush.bf16.msra.mxu3 %v560_v19 }
  0x30   :  { %449 = vmatmul.msk.bf16.vlgmr.msrb.gmra.mxu1 %vm133_vm0, %v546_v6 }
  0x31   :  { %308 = vmatpush.bf16.msra.mxu2 %v551_v13 }
  0x32   :  { %406 = vmatpush.bf16.msra.mxu0 %v568_v44 }
  0x33   :  { %322 = vmatpush.bf16.msra.mxu3 %v559_v20 }
  0x35   :  { %309 = vmatpush.bf16.msra.mxu2 %v550_v15 }
  0x36   :  { %407 = vmatpush.bf16.msra.mxu0 %v567_v45 }
  0x37   :  { %323 = vmatpush.bf16.msra.mxu3 %v558_v21 }
  0x39   :  { %310 = vmatpush.bf16.msra.mxu2 %v549_v17 }
  0x3a   :  { %408 = vmatpush.bf16.msra.mxu0 %v566_v46 }
  0x3b   :  { %324 = vmatpush.bf16.msra.mxu3 %v557_v22 }
  0x3e   :  { %409 = vmatpush.bf16.msra.mxu0 %v565_v47 }
  0x9d   :  { %v146_v24 = vpop.f32.mrf.mxu1 }
  0x9e   :  { %v147_v26 = vadd.f32 %v146_v24, %v114_v25 }
  0xa0   :  { %v165_v29 = vmax.f32 %v147_v26, 0.0 }
  0xa5   :  { %v148_v27 = vpop.f32.mrf.mxu1 }
  0xa6   :  { %v149_v28 = vadd.f32 %v148_v27, %v114_v25 }
  0xa8   :  { %v167_v30 = vmax.f32 %v149_v28, 0.0 }
  0xaa   :  { %v169_v31 = vpack.c.bf16 %v167_v30, %v165_v29 }
  0xac   :  { %311 = vmatmul.bf16.vlgmr.msra.gmra.mxu2 %v169_v31 }
  0xad   :  { %v160_v32 = vpop.f32.mrf.mxu1 }
  0xae   :  { %v161_v34 = vadd.f32 %v160_v32, %v115_v33 }
  0xb0   :  { %v166_v37 = vmax.f32 %v161_v34, 0.0 }
  0xb5   :  { %v162_v35 = vpop.f32.mrf.mxu1 }
  0xb6   :  { %v163_v36 = vadd.f32 %v162_v35, %v115_v33 }
  0xb8   :  { %v168_v38 = vmax.f32 %v163_v36, 0.0 }
  0xba   :  { %v170_v39 = vpack.c.bf16 %v168_v38, %v166_v37 }
  0xbc   :  { %325 = vmatmul.bf16.vlgmr.msra.gmra.mxu3 %v170_v39 }
 0x12f   :  { %v312_v48 = vpop.f32.mrf.mxu2 }
 0x130   :  { %v313_v52 = vadd.f32 %v582_v50, %v312_v48 }
 0x137   :  { %v314_v51 = vpop.f32.mrf.mxu2 }
 0x138   :  { %v315_v53 = vadd.f32 %v582_v50, %v314_v51 }
 0x13f   :  { %v326_v49 = vpop.f32.mrf.mxu3 }
 0x140   :  { %v327_v54 = vadd.f32 %v326_v49, %v313_v52 }
 0x142   :  { %v331_v57 = vmax.f32 %v327_v54, 0.0 }
 0x147   :  { %v328_v55 = vpop.f32.mrf.mxu3 }
 0x148   :  { %v329_v56 = vadd.f32 %v328_v55, %v315_v53 }
 0x14a   :  { %v332_v58 = vmax.f32 %v329_v56, 0.0 }
 0x14c   :  { %v333_v59 = vpack.c.bf16 %v332_v58, %v331_v57 }
 0x14e   :  { %410 = vmatmul.bf16.vlgmr.msra.gmra.mxu0 %v333_v59 }
 0x1cb   :  { %v411_v61 = vpop.f32.mrf.mxu0 }
 0x1cc   :  { %v412_v62 = vadd.f32 %v583_v60, %v411_v61 }
 0x1ce   :  { %584 = vtanh.f32 %v412_v62 }
 0x1d3   :  { %v413_v0 = vpop.f32.mrf.mxu0 }
 0x1d4   :  { %v585_v1 = vpop.eup %584  ;;  %v414_v3 = vadd.f32 %v583_v60, %v413_v0 }
 0x1d5   :  { %v419_v4 = vmul.f32 %v585_v1, %v418_v63 }
 0x1d6   :  { %586 = vtanh.f32 %v414_v3 }
 0x1d7   :  { %v422_v5 = vadd.f32 %v421_v2, %v419_v4 }
 0x1d9   :  { %425 = vst.msk [vmem:[%s796_s8] sm:$0xff] %vm424_vm1, %v422_v5 }
 0x1dc   :  { %v587_v6 = vpop.eup %586 }
 0x1dd   :  { %v420_v7 = vmul.f32 %v587_v6, %v418_v63 }
 0x1df   :  { %v423_v8 = vadd.f32 %v421_v2, %v420_v7 }
 0x1e1   :  { %426 = vst.msk [vmem:[%s796_s8 + $0x8] sm:$0xff] %vm424_vm1, %v423_v8 }
 0x1e2   :  { %431 = vsyncpa [#allocation3], 1 }
 0x1e3   :  { %432 = vsyncpa [#allocation7], 1 }
 0x1e4   :  { %433 = vsyncpa [#allocation10], 1 }
 0x1e5   :  { %434 = vsyncpa [#allocation4], 1 }

</bundles_post_ra>
